<compile_context>
chip_gen: v7x
topology: tpu7x:2x2x1
jax: 0.10.0
libtpu: 0.0.40
codegen_flags: <defaults>
</compile_context>

<pallas_src>
import jax
import jax.numpy as jnp
import numpy as np
from jax.experimental import pallas as pl
from jax.experimental.pallas import tpu as pltpu


def _conv1x1_kernel(x_ref, w_ref, o_ref):
    # x_ref: (Cin, TP)   pooled activations: channels on sublanes, pixels on lanes
    # w_ref: (Cout, Cin) 1x1 conv weight
    # o_ref: (Cout, TP)
    o_ref[...] = jnp.dot(
        w_ref[...], x_ref[...], preferred_element_type=jnp.float32
    ).astype(o_ref.dtype)


def _round_up(x, m):
    return -(-x // m) * m


def _vmem_capacity_bytes():
    """Physical per-TensorCore VMEM (64 MiB on v7x, 128 MiB on v5e/v6e)."""
    try:
        return int(pltpu.get_tpu_info().vmem_capacity_bytes)
    except Exception:
        return 64 * 1024 * 1024  # conservative fallback (v7x per-core VMEM)


def _choose_lane_tile(p_total, n_batch, cin, cout, itemsize):
    """Pick the pooled-pixel lane tile TP (multiple of 128 or the full dim).

    Returns (TP, P_pad, vmem_limit_bytes).  The double-buffered input and
    output blocks plus the double-buffered weight block are kept under ~40% of
    the physical VMEM of the current TPU generation.
    """
    vmem = _vmem_capacity_bytes()
    budget = int(vmem * 0.4)
    per_lane = 2 * (cin + cout) * itemsize      # double-buffered in + out blocks
    fixed = 2 * cout * cin * itemsize           # double-buffered weight block
    tp_max = max(0, budget - fixed) // per_lane
    tp_max = max(128, min(32768, (tp_max // 128) * 128))

    if p_total <= tp_max:
        tp, p_pad = p_total, p_total            # full-dim block: always legal
        if n_batch == 1 and p_total >= 256:
            # keep >= 2 grid steps so v7x's two TensorCores both get work
            tp = _round_up(-(-p_total // 2), 128)
            p_pad = _round_up(p_total, tp)
    elif p_total % 128 == 0:
        tp = 0
        for k in range(tp_max // 128, 3, -1):   # prefer a divisor >= 512 lanes
            if p_total % (128 * k) == 0:
                tp = 128 * k
                break
        if tp:
            p_pad = p_total
        else:
            tp = tp_max
            p_pad = _round_up(p_total, tp)
    else:
        tp = tp_max
        p_pad = _round_up(p_total, tp)

    working = fixed + per_lane * tp
    vmem_limit = int(max(32 * 1024 * 1024,
                         min(0.9 * vmem, working + 16 * 1024 * 1024)))
    return tp, p_pad, vmem_limit


def downsample(x_nchw, weight_oi):
    """x_nchw: (N, Cin, H, W); weight_oi: (Cout, Cin) from PyTorch (Cout, Cin, 1, 1)."""
    N, Cin, H, W = x_nchw.shape
    Cout = weight_oi.shape[0]
    assert H % 2 == 0 and W % 2 == 0, "DownSample kernel requires even H and W"
    Ho, Wo = H // 2, W // 2
    P = Ho * Wo
    dtype = x_nchw.dtype
    itemsize = jnp.dtype(dtype).itemsize

    # Bilinear 0.5x (align_corners=False) == exact 2x2 average for even H, W.
    # One fused XLA pass: reads x once, writes the 4x-smaller pooled array.
    pooled = x_nchw.reshape(N, Cin, Ho, 2, Wo, 2).mean(axis=(3, 5)).astype(dtype)
    # FREE reshape (no transpose anywhere): channels -> sublanes, pixels -> lanes.
    x_flat = pooled.reshape(N, Cin, P)

    TP, P_pad, vmem_limit = _choose_lane_tile(P, N, Cin, Cout, itemsize)
    if P_pad != P:
        # Rare path: pads the 4x-smaller pooled array and fuses with the
        # pooling producer under jit (no extra HBM pass over the raw input).
        x_flat = jnp.pad(x_flat, ((0, 0), (0, 0), (0, P_pad - P)))

    w = weight_oi.astype(dtype)
    grid = (N, P_pad // TP)
    flops = 2 * N * Cout * Cin * P_pad
    bytes_accessed = (N * Cin * P_pad + Cout * Cin + N * Cout * P_pad) * itemsize

    out_flat = pl.pallas_call(
        _conv1x1_kernel,
        out_shape=jax.ShapeDtypeStruct((N, Cout, P_pad), dtype),
        grid=grid,
        in_specs=[
            pl.BlockSpec((None, Cin, TP), lambda n, p: (n, 0, p)),
            # Constant-index weight block: the pipeline DMAs it once and keeps
            # it resident; its (default) double-buffered footprint is included
            # in the VMEM budget above.
            pl.BlockSpec((Cout, Cin), lambda n, p: (0, 0)),
        ],
        out_specs=pl.BlockSpec((None, Cout, TP), lambda n, p: (n, 0, p)),
        compiler_params=pltpu.CompilerParams(
            dimension_semantics=("parallel", "parallel"),
            vmem_limit_bytes=vmem_limit,
        ),
        cost_estimate=pl.CostEstimate(
            flops=flops, transcendentals=0, bytes_accessed=bytes_accessed),
    )(x_flat, w)

    if P_pad != P:
        out_flat = out_flat[:, :, :P]
    # (N, Cout, P) -> NCHW via a free reshape (no output-side transpose).
    return out_flat.reshape(N, Cout, Ho, Wo)


def downsample_reference(x_nchw, weight_oi):
    """Plain-JAX reference: 2x2 average pool then 1x1 conv (no bias)."""
    N, Cin, H, W = x_nchw.shape
    x_pool = x_nchw.reshape(N, Cin, H // 2, 2, W // 2, 2).mean(axis=(3, 5))
    return jnp.einsum("oc,nchw->nohw", weight_oi, x_pool)


if __name__ == "__main__":
    # Small shapes consistent with DownSample(in_channels=4, s_factor=4)
    N, Cin, H, W = 2, 4, 16, 16
    s_factor = 4
    Cout = Cin + s_factor

    key = jax.random.PRNGKey(0)
    kx, kw = jax.random.split(key)
    x = jax.random.normal(kx, (N, Cin, H, W), dtype=jnp.float32)
    # PyTorch conv weight is (Cout, Cin, 1, 1) with bias=False; deterministic init.
    weight = jax.random.normal(kw, (Cout, Cin), dtype=jnp.float32) * 0.1

    fwd = jax.jit(downsample)
    out = jax.block_until_ready(fwd(x, weight))

    ref = downsample_reference(x, weight)
    assert out.shape == (N, Cout, H // 2, W // 2), out.shape
    np.testing.assert_allclose(np.asarray(out), np.asarray(ref),
                               rtol=1e-5, atol=1e-5)
    print("KERNEL_OK")
</pallas_src>

<mosaic_0001>
module attributes {stable_mosaic.version = 11 : i64} {
  func.func @_conv1x1_kernel(%arg0: i32, %arg1: i32, %arg2: memref<1x4x64xf32, #tpu.memory_space<vmem>>, %arg3: memref<8x4xf32, #tpu.memory_space<vmem>>, %arg4: memref<1x8x64xf32, #tpu.memory_space<vmem>>) attributes {dimension_semantics = [#tpu.dimension_semantics<parallel>, #tpu.dimension_semantics<parallel>], iteration_bounds = array<i64: 2, 1>, scalar_prefetch = 0 : i64, scratch_operands = 0 : i64, tpu.core_type = #tpu.core_type<tc>, window_params = [{transform_indices = @transform_0, window_bounds = array<i64: 1, 4, 64>}, {pipeline_mode = #tpu.pipeline_mode<synchronous>, transform_indices = @transform_1, window_bounds = array<i64: 8, 4>}, {transform_indices = @transform_2, window_bounds = array<i64: 1, 8, 64>}]} {
    %c0 = arith.constant 0 : index
    %c0_0 = arith.constant 0 : index
    %0 = vector.load %arg3[%c0, %c0_0] : memref<8x4xf32, #tpu.memory_space<vmem>>, vector<8x4xf32>
    %c0_1 = arith.constant 0 : index
    %c0_2 = arith.constant 0 : index
    %c0_3 = arith.constant 0 : index
    %1 = vector.load %arg2[%c0_1, %c0_2, %c0_3] : memref<1x4x64xf32, #tpu.memory_space<vmem>>, vector<1x4x64xf32>
    %2 = vector.shape_cast %1 : vector<1x4x64xf32> to vector<4x64xf32>
    %cst = arith.constant dense<0.000000e+00> : vector<8x64xf32>
    %3 = tpu.matmul %0, %2, %cst {dimension_numbers = #tpu.dot_dimension_numbers<[1], [0], [0], [1], [0, 0, 1, 1], [], []>} : vector<8x4xf32>, vector<4x64xf32>, vector<8x64xf32> -> vector<8x64xf32>
    %c0_4 = arith.constant 0 : index
    %c0_5 = arith.constant 0 : index
    %c0_6 = arith.constant 0 : index
    %4 = vector.load %arg4[%c0_4, %c0_5, %c0_6] : memref<1x8x64xf32, #tpu.memory_space<vmem>>, vector<1x8x64xf32>
    %5 = vector.shape_cast %4 : vector<1x8x64xf32> to vector<8x64xf32>
    %6 = vector.shape_cast %3 : vector<8x64xf32> to vector<1x8x64xf32>
    tpu.vector_store %arg4[%c0_4, %c0_5, %c0_6], %6 {strides = array<i32>} : memref<1x8x64xf32, #tpu.memory_space<vmem>>, vector<1x8x64xf32>,
    return
  }
  func.func @transform_0(%arg0: i32, %arg1: i32) -> (i32, i32, i32) {
    %c0_i32 = arith.constant 0 : i32
    %c0_i32_0 = arith.constant 0 : i32
    return %arg0, %c0_i32, %arg1 : i32, i32, i32
  }
  func.func @transform_1(%arg0: i32, %arg1: i32) -> (i32, i32) {
    %c0_i32 = arith.constant 0 : i32
    %c0_i32_0 = arith.constant 0 : i32
    %c0_i32_1 = arith.constant 0 : i32
    return %c0_i32, %c0_i32_0 : i32, i32
  }
  func.func @transform_2(%arg0: i32, %arg1: i32) -> (i32, i32, i32) {
    %c0_i32 = arith.constant 0 : i32
    %c0_i32_0 = arith.constant 0 : i32
    return %arg0, %c0_i32, %arg1 : i32, i32, i32
  }
}

</mosaic_0001>

<bundles_post_ra>
// kernel: downsample.1
= control target key start
LH: loop header
LB: loop body
LE: loop exit
PB: predicated region body
PF: predicated region fallthrough
CT: control target
= control target key end

     0   :  { %s411_s9 = smov 0   ;;  %s413_s10 = smov 0   ;;  %s444_s0 = inlined_call_operand.vmem [shape: f32[2,4,64], index: 0, kind: input, shape index: {}]   ;;  %s445_s1 = inlined_call_operand.vmem [shape: f32[8,4], index: 1, kind: input, shape index: {}]   ;;  %s446_s2 = inlined_call_operand.vmem [shape: f32[2,8,64], index: 2, kind: output, shape index: {}]  }
   0x1   :  { %s415_s11 = smov 0  }
   0x2 LB: > { %s24_s12 = sadd.s32 1, %s388_s10  ;;  %p330_p0 = scmp.ge.s32.totalorder %s392_s11, 1  ;;  %s392_s11 = sphi %s415_s11, %s12_s11   ;;  %s388_s10 = sphi %s413_s10, %s448_s10   ;;  %s384_s9 = sphi %s411_s9, %s447_s9  }
   0x3   : > { %p26_p1 = scmp.ge.s32.totalorder %s24_s12, 2  ;;  %p130_p2 = scmp.lt.s32.totalorder %s392_s11, 3 }
   0x5   : > { %s450_s12 = smov (%p26_p1, %s24_s12), 0  ;;  %p131_p3 = pnand %p330_p0, %p130_p2 }
   0x6   : > { %p156_p4 = scmp.lt.s32.totalorder (!%p131_p3), %s384_s9, 1  ;;  %v394_v0 = vmov (!%p131_p3), 0.0   ;;  %vm395_vm0 = vmmov (!%p131_p3), 0   ;;  %vm176_vm1 = vcmask (!%p131_p3), 1043456   ;;  %v170_v1 = vld [vmem:[%s445_s1] sm:$0xff] (!%p131_p3)  ;;  %vm172_vm2 = vcmask (!%p131_p3), 31744  }
   0x7   : > { %134 = sbr.rel (%p131_p3) target bundleno = 232 (0xe8), region = 28  ;;  %339 = vmatprep.subr.mxu0 (!%p131_p3), %v394_v0  ;;  %341 = vmatprep.mubr.msk.f32.mxu0 (!%p131_p3), %vm395_vm0, %v394_v0  ;;  %vm250_vm3 = vcmask (!%p131_p3), 523264  }
   0xe   : > { %s452_s9 = smov (!%p156_p4, %s384_s9), 1 }
   0xf   : > { %s331_s13 = sshll.u32 %s452_s9, 2  ;;  %s332_s19 = sshll.u32 %s452_s9, 3 }
  0x10   : > { %s162_s16 = scalar_lea.vmem %s444_s0, %s331_s13  ;;  %s169_s22 = scalar_lea.vmem %s446_s2, %s332_s19 }
  0x11   : > { %v171_v2 = vld [vmem:[%s162_s16] sm:$0xf] }
  0x12   : > { %340 = vmatpush3.msk.msra.mxu0 %vm176_vm1, %v171_v2 }
  0x13   : > { %342 = vmatmul.mubr.msk.f32.vlgmr.msra.gmra.mrb[0].mxu0 %vm172_vm2, %v170_v1 }
  0xe6   : > { %v246_v3 = vpop.f32.mrb[0].mxu0 }
  0xe7   : > { %251 = vst.msk [vmem:[%s169_s22] sm:$0xff] %vm250_vm3, %v246_v3  ;;  %v343_v4 = vpop.f32.mrb[1].mxu0 }
  0xe8 PF: > { %s12_s11 = sadd.s32 1, %s392_s11   ;;  %s447_s9 = smov %s388_s10 }
  0xe9   : > { %p9_p5 = scmp.ge.s32.totalorder %s12_s11, 4   ;;  %s448_s10 = smov %s450_s12 }
  0xeb   :  { %11 = sbr.rel (!%p9_p5) target bundleno = 2 (0x2), region = 58 }

</bundles_post_ra>
